<compile_context>
chip_gen: v6e
topology: v6e:2x2x1
jax: 0.10.0
libtpu: 0.0.40
codegen_flags: <defaults>
</compile_context>

<pallas_src>
import functools

import jax
import jax.numpy as jnp
from jax.experimental import pallas as pl
from jax.experimental.pallas import tpu as pltpu


def _round_up(x, m):
    return (x + m - 1) // m * m


def _softplus_clamped(z):
    # Stable softplus: -log sigmoid(x) = softplus(-x); -log(1-sigmoid(x)) = softplus(x).
    # min(., 100) == PyTorch's BCE log clamp at -100 (weight applied afterwards).
    sp = jnp.maximum(z, 0.0) + jnp.log(1.0 + jnp.exp(-jnp.abs(z)))
    return jnp.minimum(sp, 100.0)


def _dann_loss_kernel(fs_ref, ft_ref, cs_ref, ct_ref, w1_ref, w2_ref,
                      b12_ref, w3b_ref, out_ref, *, tm):
    # One grid step = tm source rows + tm target rows (padded rows have coef 0).
    f = jnp.concatenate([fs_ref[...], ft_ref[...]], axis=0)          # (2*tm, F)

    # --- MLP trunk: two MXU matmuls with f32 accumulation -----------------
    h1 = jnp.maximum(
        jnp.dot(f, w1_ref[...], preferred_element_type=jnp.float32)
        + b12_ref[0:1, :], 0.0)                                       # (2*tm, H) f32
    h1 = h1.astype(w2_ref.dtype)                                      # no-op in f32 path
    h2 = jnp.maximum(
        jnp.dot(h1, w2_ref[...], preferred_element_type=jnp.float32)
        + b12_ref[1:2, :], 0.0)                                       # (2*tm, H) f32

    # --- final Linear(H, 1): VPU multiply + lane reduce (not the MXU) -----
    w3_row = w3b_ref[0:1, :]                                          # (1, H)
    b3 = w3b_ref[1:2, 0:1]                                            # (1, 1)
    logits = jnp.sum(h2 * w3_row, axis=-1, keepdims=True) + b3        # (2*tm, 1)

    # --- weighted BCE from logits (static per-tile source/target split) ---
    # source rows (label 1): softplus(-x) ; target rows (label 0): softplus(+x)
    loss_s = jnp.sum(cs_ref[...] * _softplus_clamped(-logits[:tm]))
    loss_t = jnp.sum(ct_ref[...] * _softplus_clamped(logits[tm:]))
    out_ref[0, 0] = loss_s + loss_t


def _pad_rows(x, rows):
    pad = rows - x.shape[0]
    if pad == 0:
        return x
    return jnp.pad(x, ((0, pad), (0, 0)))


def domain_adversarial_loss(f_s, f_t, params, w_s=None, w_t=None, *,
                            compute_dtype=jnp.float32, row_tile=256):
    """Pallas TPU implementation of DomainAdversarialLoss.forward
    (sigmoid=True, reduction='mean'). Returns a float32 scalar.

    Set compute_dtype=jnp.bfloat16 at realistic tllib sizes (F~2048, H~1024)
    to halve HBM bytes for f/W1/W2 and hit the bf16 MXU full rate; the dot
    accumulation and the BCE epilogue stay in f32.
    """
    n_s, feat = f_s.shape
    n_t, feat_t = f_t.shape
    if feat != feat_t:
        raise ValueError("f_s and f_t must have the same feature dimension")
    if n_s == 0 or n_t == 0:
        raise ValueError("empty source/target batch (would divide by zero)")
    hidden = params["w1"].shape[1]

    if w_s is None:
        w_s = jnp.ones((n_s,), jnp.float32)
    if w_t is None:
        w_t = jnp.ones((n_t,), jnp.float32)

    # Per-row coefficient: 0.5 * w_i / N_domain  (folds 'mean' and the 0.5).
    coef_s = (0.5 / n_s) * w_s.astype(jnp.float32).reshape(n_s, 1)
    coef_t = (0.5 / n_t) * w_t.astype(jnp.float32).reshape(n_t, 1)

    # --- row-tile derivation (multiple of 8 sublanes; 16 for bf16 packing) --
    is_bf16 = jnp.dtype(compute_dtype) == jnp.dtype(jnp.bfloat16)
    row_align = 16 if is_bf16 else 8
    tm = min(int(row_tile), _round_up(max(n_s, n_t), row_align))
    tm = _round_up(tm, row_align)
    n_tiles = max(pl.cdiv(n_s, tm), pl.cdiv(n_t, tm))
    rows = n_tiles * tm

    # Pad each domain independently (zero-coef rows contribute exactly 0).
    # No wrapper-side concat of f_s/f_t; padding is a no-op when N % tm == 0.
    fs = _pad_rows(f_s.astype(compute_dtype), rows)
    ft = _pad_rows(f_t.astype(compute_dtype), rows)
    cs = _pad_rows(coef_s, rows)
    ct = _pad_rows(coef_t, rows)

    w1 = params["w1"].astype(compute_dtype)                           # (F, H)
    w2 = params["w2"].astype(compute_dtype)                           # (H, H)
    b12 = jnp.concatenate([
        params["b1"].reshape(1, hidden),
        params["b2"].reshape(1, hidden),
    ], axis=0).astype(jnp.float32)                                    # (2, H)
    w3b = jnp.concatenate([
        params["w3"].reshape(1, hidden),
        jnp.broadcast_to(params["b3"].reshape(1, 1), (1, hidden)),
    ], axis=0).astype(jnp.float32)                                    # (2, H)

    kernel = functools.partial(_dann_loss_kernel, tm=tm)

    # --- VMEM budget (explicit; v5e default scoped = 16 MiB, v7x phys = 64) --
    itemsize = jnp.dtype(compute_dtype).itemsize
    lane = 128
    f_lane = max(feat, lane)
    h_lane = max(hidden, lane)
    vmem_est = (
        2 * 2 * tm * f_lane * itemsize        # fs/ft tiles, double-buffered
        + 2 * 2 * tm * lane * 4               # coef tiles (lane-padded), x2 buf
        + 2 * (feat * h_lane + hidden * h_lane) * itemsize   # resident weights
        + 4 * 8 * h_lane * 4                  # bias / w3 rows (tile-padded)
        + 3 * 2 * tm * h_lane * 4             # f / h1 / h2 temporaries (f32)
    )
    vmem_limit = int(min(56 * 2**20, max(2 * vmem_est, 16 * 2**20)))

    flops = 2 * (2 * rows) * (feat * hidden + hidden * hidden + hidden)
    bytes_accessed = int(2 * rows * feat * itemsize
                         + (feat * hidden + hidden * hidden) * itemsize
                         + 2 * rows * 4 + 4 * hidden * 4 + n_tiles * 4)
    cost = pl.CostEstimate(flops=flops, transcendentals=2 * rows,
                           bytes_accessed=bytes_accessed)

    partials = pl.pallas_call(
        kernel,
        out_shape=jax.ShapeDtypeStruct((n_tiles, 1), jnp.float32),
        grid=(n_tiles,),
        in_specs=[
            pl.BlockSpec((tm, feat), lambda i: (i, 0)),      # f_s tile (streamed)
            pl.BlockSpec((tm, feat), lambda i: (i, 0)),      # f_t tile (streamed)
            pl.BlockSpec((tm, 1), lambda i: (i, 0)),         # coef_s tile
            pl.BlockSpec((tm, 1), lambda i: (i, 0)),         # coef_t tile
            pl.BlockSpec((feat, hidden), lambda i: (0, 0)),  # w1 (resident)
            pl.BlockSpec((hidden, hidden), lambda i: (0, 0)),  # w2 (resident)
            pl.BlockSpec((2, hidden), lambda i: (0, 0)),     # b1/b2 (resident)
            pl.BlockSpec((2, hidden), lambda i: (0, 0)),     # w3/b3 (resident)
        ],
        out_specs=pl.BlockSpec((1, 1), lambda i: (i, 0),
                               memory_space=pltpu.MemorySpace.SMEM),
        compiler_params=pltpu.CompilerParams(
            dimension_semantics=("parallel",),
            vmem_limit_bytes=vmem_limit),
        cost_estimate=cost,
    )(fs, ft, cs, ct, w1, w2, b12, w3b)

    # Disjoint per-tile partials -> scalar (fused by XLA around the call).
    return jnp.sum(partials)
    # TODO(synk): domain_discriminator_accuracy side statistic of the PyTorch
    # module is not computed (it is not part of the returned loss).


def _reference_loss(f_s, f_t, params, w_s, w_t):
    """Pure-JAX reference (literal sigmoid->log->clamp PyTorch path)."""
    f = jnp.concatenate([f_s, f_t], axis=0)
    h1 = jax.nn.relu(f @ params["w1"] + params["b1"])
    h2 = jax.nn.relu(h1 @ params["w2"] + params["b2"])
    d = jax.nn.sigmoid(h2 @ params["w3"] + params["b3"])
    n_s = f_s.shape[0]
    d_s, d_t = d[:n_s], d[n_s:]
    ls = -(w_s.reshape(-1, 1) * jnp.maximum(jnp.log(d_s), -100.0))
    lt = -(w_t.reshape(-1, 1) * jnp.maximum(jnp.log(1.0 - d_t), -100.0))
    return 0.5 * (jnp.mean(ls) + jnp.mean(lt))


if __name__ == "__main__":
    key = jax.random.PRNGKey(0)
    ks = jax.random.split(key, 12)

    F_DIM, H_DIM = 32, 32
    params = {
        "w1": 0.1 * jax.random.normal(ks[4], (F_DIM, H_DIM), jnp.float32),
        "b1": jnp.zeros((1, H_DIM), jnp.float32),
        "w2": 0.1 * jax.random.normal(ks[5], (H_DIM, H_DIM), jnp.float32),
        "b2": jnp.zeros((1, H_DIM), jnp.float32),
        "w3": 0.1 * jax.random.normal(ks[6], (H_DIM, 1), jnp.float32),
        "b3": jnp.zeros((1, 1), jnp.float32),
    }

    # --- Case 1: N=8 per domain, single tile, f32 (tight tolerance) -------
    N1 = 8
    f_s1 = jax.random.normal(ks[0], (N1, F_DIM), jnp.float32)
    f_t1 = jax.random.normal(ks[1], (N1, F_DIM), jnp.float32)
    w_s1 = jax.random.uniform(ks[2], (N1,), jnp.float32, 0.5, 1.5)
    w_t1 = jax.random.uniform(ks[3], (N1,), jnp.float32, 0.5, 1.5)

    loss1 = domain_adversarial_loss(f_s1, f_t1, params, w_s1, w_t1)
    jax.block_until_ready(loss1)
    ref1 = _reference_loss(f_s1, f_t1, params, w_s1, w_t1)
    assert jnp.allclose(loss1, ref1, atol=1e-5, rtol=1e-5), (loss1, ref1)

    # --- Case 2: N=12 per domain, row_tile=8 -> 2-tile grid + row padding --
    N2 = 12
    f_s2 = jax.random.normal(ks[7], (N2, F_DIM), jnp.float32)
    f_t2 = jax.random.normal(ks[8], (N2, F_DIM), jnp.float32)
    w_s2 = jax.random.uniform(ks[9], (N2,), jnp.float32, 0.5, 1.5)
    w_t2 = jax.random.uniform(ks[10], (N2,), jnp.float32, 0.5, 1.5)

    loss2 = domain_adversarial_loss(f_s2, f_t2, params, w_s2, w_t2, row_tile=8)
    jax.block_until_ready(loss2)
    ref2 = _reference_loss(f_s2, f_t2, params, w_s2, w_t2)
    assert jnp.allclose(loss2, ref2, atol=1e-5, rtol=1e-5), (loss2, ref2)

    # --- Case 3: bf16 carriage of f/W1/W2 (loose tolerance vs f32 ref) -----
    loss3 = domain_adversarial_loss(f_s1, f_t1, params, w_s1, w_t1,
                                    compute_dtype=jnp.bfloat16)
    jax.block_until_ready(loss3)
    assert jnp.allclose(loss3, ref1, atol=3e-2, rtol=3e-2), (loss3, ref1)

    print("KERNEL_OK")
</pallas_src>

<mosaic_0001>
module attributes {stable_mosaic.version = 11 : i64} {
  func.func @_dann_loss_kernel(%arg0: i32, %arg1: memref<8x32xf32, #tpu.memory_space<vmem>>, %arg2: memref<8x32xf32, #tpu.memory_space<vmem>>, %arg3: memref<8x1xf32, #tpu.memory_space<vmem>>, %arg4: memref<8x1xf32, #tpu.memory_space<vmem>>, %arg5: memref<32x32xf32, #tpu.memory_space<vmem>>, %arg6: memref<32x32xf32, #tpu.memory_space<vmem>>, %arg7: memref<2x32xf32, #tpu.memory_space<vmem>>, %arg8: memref<2x32xf32, #tpu.memory_space<vmem>>, %arg9: memref<1x1xf32, #tpu.memory_space<smem>>) attributes {dimension_semantics = [#tpu.dimension_semantics<parallel>], iteration_bounds = array<i64: 1>, scalar_prefetch = 0 : i64, scratch_operands = 0 : i64, tpu.core_type = #tpu.core_type<tc>, window_params = [{transform_indices = @transform_0, window_bounds = array<i64: 8, 32>}, {transform_indices = @transform_1, window_bounds = array<i64: 8, 32>}, {transform_indices = @transform_2, window_bounds = array<i64: 8, 1>}, {transform_indices = @transform_3, window_bounds = array<i64: 8, 1>}, {pipeline_mode = #tpu.pipeline_mode<synchronous>, transform_indices = @transform_4, window_bounds = array<i64: 32, 32>}, {pipeline_mode = #tpu.pipeline_mode<synchronous>, transform_indices = @transform_5, window_bounds = array<i64: 32, 32>}, {pipeline_mode = #tpu.pipeline_mode<synchronous>, transform_indices = @transform_6, window_bounds = array<i64: 2, 32>}, {pipeline_mode = #tpu.pipeline_mode<synchronous>, transform_indices = @transform_7, window_bounds = array<i64: 2, 32>}, {transform_indices = @transform_8, window_bounds = array<i64: 1, 1>}]} {
    %c0 = arith.constant 0 : index
    %c0_0 = arith.constant 0 : index
    %0 = vector.load %arg1[%c0, %c0_0] : memref<8x32xf32, #tpu.memory_space<vmem>>, vector<8x32xf32>
    %c0_1 = arith.constant 0 : index
    %c0_2 = arith.constant 0 : index
    %1 = vector.load %arg2[%c0_1, %c0_2] : memref<8x32xf32, #tpu.memory_space<vmem>>, vector<8x32xf32>
    %2 = tpu.concatenate %0, %1 in 0 : vector<8x32xf32>, vector<8x32xf32> -> vector<16x32xf32>
    %c0_3 = arith.constant 0 : index
    %c0_4 = arith.constant 0 : index
    %3 = vector.load %arg5[%c0_3, %c0_4] : memref<32x32xf32, #tpu.memory_space<vmem>>, vector<32x32xf32>
    %cst = arith.constant dense<0.000000e+00> : vector<16x32xf32>
    %4 = tpu.matmul %2, %3, %cst {dimension_numbers = #tpu.dot_dimension_numbers<[1], [0], [0], [1], [0, 0, 1, 1], [], []>} : vector<16x32xf32>, vector<32x32xf32>, vector<16x32xf32> -> vector<16x32xf32>
    %c0_5 = arith.constant 0 : index
    %c0_6 = arith.constant 0 : index
    %5 = vector.load %arg7[%c0_5, %c0_6] : memref<2x32xf32, #tpu.memory_space<vmem>>, vector<1x32xf32>
    %6 = vector.broadcast %5 : vector<1x32xf32> to vector<16x32xf32>
    %7 = arith.addf %4, %6 : vector<16x32xf32>
    %cst_7 = arith.constant 0.000000e+00 : f32
    %8 = vector.broadcast %cst_7 : f32 to vector<16x32xf32>
    %9 = arith.maximumf %7, %8 : vector<16x32xf32>
    %c0_8 = arith.constant 0 : index
    %c0_9 = arith.constant 0 : index
    %10 = vector.load %arg6[%c0_8, %c0_9] : memref<32x32xf32, #tpu.memory_space<vmem>>, vector<32x32xf32>
    %cst_10 = arith.constant dense<0.000000e+00> : vector<16x32xf32>
    %11 = tpu.matmul %9, %10, %cst_10 {dimension_numbers = #tpu.dot_dimension_numbers<[1], [0], [0], [1], [0, 0, 1, 1], [], []>} : vector<16x32xf32>, vector<32x32xf32>, vector<16x32xf32> -> vector<16x32xf32>
    %c1 = arith.constant 1 : index
    %c0_11 = arith.constant 0 : index
    %12 = vector.load %arg7[%c1, %c0_11] : memref<2x32xf32, #tpu.memory_space<vmem>>, vector<1x32xf32>
    %13 = vector.broadcast %12 : vector<1x32xf32> to vector<16x32xf32>
    %14 = arith.addf %11, %13 : vector<16x32xf32>
    %cst_12 = arith.constant 0.000000e+00 : f32
    %15 = vector.broadcast %cst_12 : f32 to vector<16x32xf32>
    %16 = arith.maximumf %14, %15 : vector<16x32xf32>
    %c0_13 = arith.constant 0 : index
    %c0_14 = arith.constant 0 : index
    %17 = vector.load %arg8[%c0_13, %c0_14] : memref<2x32xf32, #tpu.memory_space<vmem>>, vector<1x32xf32>
    %c1_15 = arith.constant 1 : index
    %c0_16 = arith.constant 0 : index
    %18 = vector.load %arg8[%c1_15, %c0_16] : memref<2x32xf32, #tpu.memory_space<vmem>>, vector<1x1xf32>
    %19 = vector.broadcast %17 : vector<1x32xf32> to vector<16x32xf32>
    %20 = arith.mulf %16, %19 : vector<16x32xf32>
    %cst_17 = arith.constant dense<0.000000e+00> : vector<16xf32>
    %21 = vector.multi_reduction <add>, %20, %cst_17 [1] : vector<16x32xf32> to vector<16xf32>
    %22 = vector.shape_cast %21 : vector<16xf32> to vector<16x1xf32>
    %23 = vector.broadcast %18 : vector<1x1xf32> to vector<16x1xf32>
    %24 = arith.addf %22, %23 : vector<16x1xf32>
    %c0_18 = arith.constant 0 : index
    %c0_19 = arith.constant 0 : index
    %25 = vector.load %arg3[%c0_18, %c0_19] : memref<8x1xf32, #tpu.memory_space<vmem>>, vector<8x1xf32>
    %26 = vector.extract_strided_slice %24 {offsets = [0, 0], sizes = [8, 1], strides = [1, 1]} : vector<16x1xf32> to vector<8x1xf32>
    %cst_20 = arith.constant 0.000000e+00 : f32
    %27 = vector.broadcast %cst_20 : f32 to vector<8x1xf32>
    %28 = arith.subf %27, %26 : vector<8x1xf32>
    %cst_21 = arith.constant 0.000000e+00 : f32
    %29 = vector.broadcast %cst_21 : f32 to vector<8x1xf32>
    %30 = arith.maximumf %28, %29 : vector<8x1xf32>
    %31 = math.absf %28 : vector<8x1xf32>
    %cst_22 = arith.constant 0.000000e+00 : f32
    %32 = vector.broadcast %cst_22 : f32 to vector<8x1xf32>
    %33 = arith.subf %32, %31 : vector<8x1xf32>
    %34 = math.exp %33 : vector<8x1xf32>
    %cst_23 = arith.constant 1.000000e+00 : f32
    %35 = vector.broadcast %cst_23 : f32 to vector<8x1xf32>
    %36 = arith.addf %35, %34 : vector<8x1xf32>
    %37 = math.log %36 : vector<8x1xf32>
    %38 = arith.addf %30, %37 : vector<8x1xf32>
    %cst_24 = arith.constant 1.000000e+02 : f32
    %39 = vector.broadcast %cst_24 : f32 to vector<8x1xf32>
    %40 = arith.minimumf %38, %39 : vector<8x1xf32>
    %41 = arith.mulf %25, %40 : vector<8x1xf32>
    %42 = vector.shape_cast %41 : vector<8x1xf32> to vector<1x8x1xf32>
    %cst_25 = arith.constant dense<0.000000e+00> : vector<1xf32>
    %43 = vector.multi_reduction <add>, %42, %cst_25 [1, 2] : vector<1x8x1xf32> to vector<1xf32>
    %44 = vector.shape_cast %43 : vector<1xf32> to vector<1x1x1xf32>
    %45 = vector.extract %44[0, 0, 0] : f32 from vector<1x1x1xf32>
    %c0_26 = arith.constant 0 : index
    %c0_27 = arith.constant 0 : index
    %46 = vector.load %arg4[%c0_26, %c0_27] : memref<8x1xf32, #tpu.memory_space<vmem>>, vector<8x1xf32>
    %47 = vector.extract_strided_slice %24 {offsets = [8, 0], sizes = [8, 1], strides = [1, 1]} : vector<16x1xf32> to vector<8x1xf32>
    %cst_28 = arith.constant 0.000000e+00 : f32
    %48 = vector.broadcast %cst_28 : f32 to vector<8x1xf32>
    %49 = arith.maximumf %47, %48 : vector<8x1xf32>
    %50 = math.absf %47 : vector<8x1xf32>
    %cst_29 = arith.constant 0.000000e+00 : f32
    %51 = vector.broadcast %cst_29 : f32 to vector<8x1xf32>
    %52 = arith.subf %51, %50 : vector<8x1xf32>
    %53 = math.exp %52 : vector<8x1xf32>
    %cst_30 = arith.constant 1.000000e+00 : f32
    %54 = vector.broadcast %cst_30 : f32 to vector<8x1xf32>
    %55 = arith.addf %54, %53 : vector<8x1xf32>
    %56 = math.log %55 : vector<8x1xf32>
    %57 = arith.addf %49, %56 : vector<8x1xf32>
    %cst_31 = arith.constant 1.000000e+02 : f32
    %58 = vector.broadcast %cst_31 : f32 to vector<8x1xf32>
    %59 = arith.minimumf %57, %58 : vector<8x1xf32>
    %60 = arith.mulf %46, %59 : vector<8x1xf32>
    %61 = vector.shape_cast %60 : vector<8x1xf32> to vector<1x8x1xf32>
    %cst_32 = arith.constant dense<0.000000e+00> : vector<1xf32>
    %62 = vector.multi_reduction <add>, %61, %cst_32 [1, 2] : vector<1x8x1xf32> to vector<1xf32>
    %63 = vector.shape_cast %62 : vector<1xf32> to vector<1x1x1xf32>
    %64 = vector.extract %63[0, 0, 0] : f32 from vector<1x1x1xf32>
    %65 = arith.addf %45, %64 : f32
    %c0_33 = arith.constant 0 : index
    %c0_34 = arith.constant 0 : index
    %66 = memref.load %arg9[%c0_33, %c0_34] : memref<1x1xf32, #tpu.memory_space<smem>>
    memref.store %65, %arg9[%c0_33, %c0_34] : memref<1x1xf32, #tpu.memory_space<smem>>
    return
  }
  func.func @transform_0(%arg0: i32) -> (i32, i32) {
    %c0_i32 = arith.constant 0 : i32
    %c0_i32_0 = arith.constant 0 : i32
    return %arg0, %c0_i32 : i32, i32
  }
  func.func @transform_1(%arg0: i32) -> (i32, i32) {
    %c0_i32 = arith.constant 0 : i32
    %c0_i32_0 = arith.constant 0 : i32
    return %arg0, %c0_i32 : i32, i32
  }
  func.func @transform_2(%arg0: i32) -> (i32, i32) {
    %c0_i32 = arith.constant 0 : i32
    %c0_i32_0 = arith.constant 0 : i32
    return %arg0, %c0_i32 : i32, i32
  }
  func.func @transform_3(%arg0: i32) -> (i32, i32) {
    %c0_i32 = arith.constant 0 : i32
    %c0_i32_0 = arith.constant 0 : i32
    return %arg0, %c0_i32 : i32, i32
  }
  func.func @transform_4(%arg0: i32) -> (i32, i32) {
    %c0_i32 = arith.constant 0 : i32
    %c0_i32_0 = arith.constant 0 : i32
    %c0_i32_1 = arith.constant 0 : i32
    return %c0_i32, %c0_i32_0 : i32, i32
  }
  func.func @transform_5(%arg0: i32) -> (i32, i32) {
    %c0_i32 = arith.constant 0 : i32
    %c0_i32_0 = arith.constant 0 : i32
    %c0_i32_1 = arith.constant 0 : i32
    return %c0_i32, %c0_i32_0 : i32, i32
  }
  func.func @transform_6(%arg0: i32) -> (i32, i32) {
    %c0_i32 = arith.constant 0 : i32
    %c0_i32_0 = arith.constant 0 : i32
    %c0_i32_1 = arith.constant 0 : i32
    return %c0_i32, %c0_i32_0 : i32, i32
  }
  func.func @transform_7(%arg0: i32) -> (i32, i32) {
    %c0_i32 = arith.constant 0 : i32
    %c0_i32_0 = arith.constant 0 : i32
    %c0_i32_1 = arith.constant 0 : i32
    return %c0_i32, %c0_i32_0 : i32, i32
  }
  func.func @transform_8(%arg0: i32) -> (i32, i32) {
    %c0_i32 = arith.constant 0 : i32
    %c0_i32_0 = arith.constant 0 : i32
    return %arg0, %c0_i32 : i32, i32
  }
}

</mosaic_0001>

<bundles_post_ra>
// kernel: tpu_custom_call.1
= control target key start
LH: loop header
LB: loop body
LE: loop exit
PB: predicated region body
PF: predicated region fallthrough
CT: control target
= control target key end

     0   :  { %13 = vsyncpa [#allocation3], 0  ;;  %s531_s0 = inlined_call_operand.vmem [shape: f32[8,32], index: 0, kind: input, shape index: {}]   ;;  %s532_s1 = inlined_call_operand.vmem [shape: f32[8,32], index: 1, kind: input, shape index: {}]   ;;  %s533_s2 = inlined_call_operand.vmem [shape: f32[8,1], index: 2, kind: input, shape index: {}]   ;;  %s534_s3 = inlined_call_operand.vmem [shape: f32[8,1], index: 3, kind: input, shape index: {}]   ;;  %s535_s4 = inlined_call_operand.hbm [shape: f32[32,32], index: 4, kind: input, shape index: {}]   ;;  %s536_s5 = inlined_call_operand.hbm [shape: f32[32,32], index: 5, kind: input, shape index: {}]   ;;  %s537_s6 = inlined_call_operand.vmem [shape: f32[2,32], index: 6, kind: input, shape index: {}]   ;;  %s538_s7 = inlined_call_operand.vmem [shape: f32[2,32], index: 7, kind: input, shape index: {}]   ;;  %s539_s8 = inlined_call_operand.hbm [shape: f32[1,1], index: 8, kind: output, shape index: {}]  }
   0x1   :  { %14 = vsyncpa [#allocation6], 0 }
   0x2   :  { %15 = vsyncpa [#allocation4], 0  ;;  %s442_s27 = smov [#allocation2]  }
   0x3   :  { %s29_s28 = sshll.u32 %s442_s27, 4  ;;  %s30_s28 = int_to_ptr.vmem [resolvable:$true] %s29_s28 }
   0x4   :  { %s396_s29 = scalar_lea.vmem %s30_s28, 512  ;;  %p401_p1 = scmp.lt.s32.totalorder %s30_s28, %s30_s28 }
   0x5   :  { %p397_p0 = scmp.ne.s32.totalorder %s30_s28, %s396_s29  ;;  %p402_p2 = scmp.lt.s32.totalorder %s396_s29, %s396_s29 }
   0x7   :  { %p403_p3 = por %p402_p2, %p401_p1 }
   0x9   :  { %p404_p4 = pnand %p403_p3, %p397_p0 }
   0xb   :  { %407 = shalt.err (!%p404_p4)
}
   0xc   :  { %s443_s30 = smov 128   ;;  %s444_s9 = smov 8  }
   0xd   :  { %35 = dma.hbm_to_vmem [thread:$0]  %s535_s4, 512, %s30_s28, [#allocation3], %s443_s30, %s443_s30, %s444_s9  }
   0xe   :  { %s445_s12 = smov [#allocation5]  }
   0xf   :  { %s41_s13 = sshll.u32 %s445_s12, 4  ;;  %s42_s13 = int_to_ptr.vmem [resolvable:$true] %s41_s13 }
  0x10   :  { %s416_s14 = scalar_lea.vmem %s42_s13, 512  ;;  %p421_p6 = scmp.lt.s32.totalorder %s42_s13, %s42_s13 }
  0x11   :  { %p417_p5 = scmp.ne.s32.totalorder %s42_s13, %s416_s14  ;;  %p422_p7 = scmp.lt.s32.totalorder %s416_s14, %s416_s14 }
  0x13   :  { %p423_p8 = por %p422_p7, %p421_p6 }
  0x15   :  { %p424_p9 = pnand %p423_p8, %p417_p5 }
  0x17   :  { %427 = shalt.err (!%p424_p9)
}
  0x18   :  { %47 = dma.hbm_to_vmem [thread:$0]  %s536_s5, 512, %s42_s13, [#allocation6], %s443_s30, %s443_s30, %s444_s9  }
  0x19   :  { %436 = dma.done.wait [#allocation3], 512  }
  0x1a   :  { %437 = vsyncadd [#allocation3], 4294966784 }
  0x1b   :  { %438 = dma.done.wait [#allocation6], 512  }
  0x1c   :  { %439 = vsyncadd [#allocation6], 4294966784  ;;  %vm69_vm0 = vcmask 261120   ;;  %v63_v0 = vld [vmem:[#allocation2 + $0x18] sm:$0xff]  ;;  %v62_v1 = vld [vmem:[#allocation2 + $0x10] sm:$0xff]  ;;  %vm278_vm1 = vcmask 7168  }
  0x1d   :  { %349 = vmatprep.subr.mxu0 %v63_v0  ;;  %v58_v2 = vld [vmem:[%s531_s0] sm:$0xff]  ;;  %v61_v3 = vld [vmem:[#allocation2 + $0x8] sm:$0xff]  ;;  %v156_v6 = vld [vmem:[#allocation5 + $0x18] sm:$0xff]  ;;  %s446_s28 = smov [#allocation7]  }
  0x1e   :  { %350 = vmatpush3.msra.mxu0 %v63_v0  ;;  %357 = vmatprep.mubr.msk.f32.mxu0 %vm69_vm0, %v58_v2  ;;  %v60_v4 = vld [vmem:[#allocation2] sm:$0xff]  ;;  %v155_v7 = vld [vmem:[#allocation5 + $0x10] sm:$0xff]  ;;  %v154_v8 = vld [vmem:[#allocation5 + $0x8] sm:$0xff] }
  0x1f   :  { %351 = vmatprep.subr.mxu0 %v62_v1  ;;  %v59_v5 = vld [vmem:[%s532_s1] sm:$0xff]  ;;  %360 = vmatprep.subr.mxu1 %v156_v6 }
  0x20   :  { %352 = vmatpush3.msra.mxu0 %v62_v1  ;;  %361 = vmatpush3.msra.mxu1 %v156_v6  ;;  %v153_v9 = vld [vmem:[#allocation5] sm:$0xff] }
  0x21   :  { %353 = vmatprep.subr.mxu0 %v61_v3  ;;  %362 = vmatprep.subr.mxu1 %v155_v7  ;;  %v329_v10 = vld [vmem:[%s537_s6] ss:$0 sm:$0xff]  ;;  %v332_v17 = vld [vmem:[%s537_s6 + $0x1] ss:$0 sm:$0xff] }
  0x22   :  { %354 = vmatpush3.msra.mxu0 %v61_v3  ;;  %363 = vmatpush3.msra.mxu1 %v155_v7  ;;  %v335_v24 = vld [vmem:[%s538_s7] ss:$0 sm:$0xff]  ;;  %v336_v29 = vld [vmem:[%s538_s7 + $0x1] ss:$0 sm:$0xff] }
  0x23   :  { %355 = vmatprep.subr.mxu0 %v60_v4  ;;  %364 = vmatprep.subr.mxu1 %v154_v8  ;;  %v265_v52 = vld [vmem:[%s533_s2] sm:$0xff] }
  0x24   :  { %356 = vmatpush3.msra.mxu0 %v60_v4  ;;  %365 = vmatpush3.msra.mxu1 %v154_v8  ;;  %v289_v55 = vld [vmem:[%s534_s3] sm:$0xff] }
  0x25   :  { %358 = vmatmul.mubr.msk.f32.vlgmr.msra.gmra.mxu0 %vm69_vm0, %v59_v5  ;;  %366 = vmatprep.subr.mxu1 %v153_v9 }
  0x26   :  { %367 = vmatpush3.msra.mxu1 %v153_v9 }
  0xe5   :  { %v359_v11 = vpop.f32.mrf.mxu0 }
  0xe6   :  { %v148_v12 = vadd.f32 %v359_v11, %v329_v10 }
  0xe7   :  { %v142_v13 = vpop.f32.mrf.mxu0 }
  0xe8   :  { %v143_v14 = vadd.f32 %v329_v10, %v142_v13  ;;  %v152_v16 = vmax.f32 %v148_v12, 0.0 }
  0xea   :  { %v151_v15 = vmax.f32 %v143_v14, 0.0 }
  0xec   :  { %368 = vmatprep.mubr.msk.f32.mxu1 %vm69_vm0, %v151_v15 }
  0xed   :  { %369 = vmatmul.mubr.msk.f32.vlgmr.msra.gmra.mxu1 %vm69_vm0, %v152_v16 }
 0x1ad   :  { %v370_v18 = vpop.f32.mrf.mxu1 }
 0x1ae   :  { %v240_v19 = vadd.f32 %v370_v18, %v332_v17 }
 0x1af   :  { %v234_v20 = vpop.f32.mrf.mxu1 }
 0x1b0   :  { %v235_v21 = vadd.f32 %v332_v17, %v234_v20  ;;  %v244_v22 = vmax.f32 %v240_v19, 0.0 }
 0x1b2   :  { %v243_v23 = vmax.f32 %v235_v21, 0.0  ;;  %v252_v27 = vmul.f32 %v335_v24, %v244_v22 }
 0x1b4   :  { %v251_v25 = vmul.f32 %v335_v24, %v243_v23  ;;  %v256_v28 = vsel %vm69_vm0, %v252_v27, 0.0 }
 0x1b6   :  { %v253_v26 = vsel %vm69_vm0, %v251_v25, 0.0 }
 0x1b7   :  { %254 = vadd.xlane.f32.xlu0 %v253_v26 }
 0x1bb   :  { %257 = vadd.xlane.f32.xlu0 %v256_v28 }
 0x240   :  { %v255_v30 = vpop.xlane.xlu0 %254 }
 0x241   :  { %v263_v31 = vadd.f32 %v336_v29, %v255_v30 }
 0x243   :  { %v266_v32 = vsub.f32 0.0, %v263_v31 }
 0x244   :  { %v258_v33 = vpop.xlane.xlu0 %257 }
 0x245   :  { %v268_v34 = vand.u32 2147483647, %v266_v32  ;;  %v264_v35 = vadd.f32 %v336_v29, %v258_v33  ;;  %v267_v46 = vmax.f32 %v266_v32, 0.0 }
 0x247   :  { %v269_v36 = vsub.f32 0.0, %v268_v34  ;;  %v291_v37 = vand.u32 2147483647, %v264_v35  ;;  %v290_v49 = vmax.f32 %v264_v35, 0.0 }
 0x249   :  { %v270_v38 = vmul.f32 1.442695, %v269_v36  ;;  %v292_v39 = vsub.f32 0.0, %v291_v37 }
 0x24b   :  { %380 = vpow2.f32 %v270_v38  ;;  %v293_v40 = vmul.f32 1.442695, %v292_v39 }
 0x24d   :  { %382 = vpow2.f32 %v293_v40 }
 0x258   :  { %v381_v41 = vpop.eup %380 }
 0x259   :  { %v272_v42 = vadd.f32 1.0, %v381_v41 }
 0x25a   :  { %v383_v43 = vpop.eup %382 }
 0x25b   :  { %384 = vlog2.f32 %v272_v42  ;;  %v295_v44 = vadd.f32 1.0, %v383_v43 }
 0x25d   :  { %386 = vlog2.f32 %v295_v44 }
 0x268   :  { %v385_v45 = vpop.eup %384 }
 0x269   :  { %v274_v47 = vmul.f32 0.6931472, %v385_v45 }
 0x26a   :  { %v387_v48 = vpop.eup %386 }
 0x26b   :  { %v297_v50 = vmul.f32 0.6931472, %v387_v48  ;;  %v275_v51 = vadd.f32 %v274_v47, %v267_v46 }
 0x26d   :  { %v298_v53 = vadd.f32 %v297_v50, %v290_v49  ;;  %v276_v54 = vmin.f32 %v275_v51, 100.0 }
 0x26f   :  { %v277_v56 = vmul.f32 %v276_v54, %v265_v52  ;;  %v299_v57 = vmin.f32 %v298_v53, 100.0 }
 0x271   :  { %v279_v58 = vsel %vm278_vm1, %v277_v56, 0.0  ;;  %v300_v59 = vmul.f32 %v299_v57, %v289_v55 }
 0x272   :  { %280 = vadd.xlane.f32.xlu1 %v279_v58 }
 0x273   :  { %v301_v60 = vsel %vm278_vm1, %v300_v59, 0.0 }
 0x276   :  { %302 = vadd.xlane.f32.xlu1 %v301_v60 }
 0x2fb   :  { %v281_v61 = vpop.xlane.xlu1 %280 }
 0x2fc   :  { %v282_v62 = vrot.slane %v281_v61, 4 }
 0x2fe   :  { %v283_v63 = vadd.f32 %v282_v62, %v281_v61 }
 0x2ff   :  { %v303_v0 = vpop.xlane.xlu1 %302 }
 0x300   :  { %v284_v1 = vrot.slane %v283_v63, 2  ;;  %v304_v2 = vrot.slane %v303_v0, 4 }
 0x302   :  { %v305_v3 = vadd.f32 %v304_v2, %v303_v0  ;;  %v285_v4 = vadd.f32 %v284_v1, %v283_v63 }
 0x304   :  { %v306_v5 = vrot.slane %v305_v3, 2  ;;  %v286_v6 = vrot.slane %v285_v4, 1 }
 0x306   :  { %v307_v7 = vadd.f32 %v306_v5, %v305_v3  ;;  %v287_v8 = vadd.f32 %v286_v6, %v285_v4 }
 0x308   :  { %371 = vpush %v287_v8  ;;  %v308_v9 = vrot.slane %v307_v7, 1 }
 0x30a   :  { %v309_v10 = vadd.f32 %v308_v9, %v307_v7 }
 0x30c   :  { %373 = vpush %v309_v10 }
 0x339   :  { %s372_s2 = spop %371 }
 0x33d   :  { %s374_s3 = spop %373 }
 0x33e   :  { %s311_s27 = sadd.f32 %s374_s3, %s372_s2 }
 0x340   :  { %313 = sst [smem:[#allocation7]] %s311_s27 }
 0x341   :  { %321 = dma.smem_to_hbm %s446_s28, 16, %s539_s8, [#allocation4]  }
 0x342   :  { %440 = dma.done.wait [#allocation4], 16  }
 0x343   :  { %441 = vsyncadd [#allocation4], 4294967280 }
 0x344   :  { %325 = sfence }
 0x345   :  { %326 = vsyncpa [#allocation3], 1 }
 0x346   :  { %327 = vsyncpa [#allocation6], 1 }
 0x347   :  { %328 = vsyncpa [#allocation4], 1 }

</bundles_post_ra>
